<compile_context>
chip_gen: v6e
topology: v6e:2x2x1
jax: 0.10.0
libtpu: 0.0.40
codegen_flags: <defaults>
</compile_context>

<pallas_src>
import functools

import jax
import jax.numpy as jnp
from jax.experimental import pallas as pl
from jax.experimental.pallas import tpu as pltpu

_VMEM_LIMIT = 32 * 1024 * 1024     # working sets are ~MiB; safe on v5e/v6e/v7x


def _round_up(x, m):
    return ((x + m - 1) // m) * m


def _pad_to(x, rows, cols):
    pr, pc = rows - x.shape[0], cols - x.shape[1]
    if pr or pc:
        x = jnp.pad(x, ((0, pr), (0, pc)))
    return x


# ----------------------------------------------------------------------------
# Tiled matmul: bf16 operands, f32 accumulate, fused bias + activation
# ----------------------------------------------------------------------------

def _mm_kernel(act):
    def kernel(a_ref, b_ref, bias_ref, o_ref, acc_ref):
        @pl.when(pl.program_id(2) == 0)
        def _():
            acc_ref[...] = jnp.zeros_like(acc_ref)

        acc_ref[...] += jnp.dot(a_ref[...], b_ref[...],
                                preferred_element_type=jnp.float32)

        @pl.when(pl.program_id(2) == pl.num_programs(2) - 1)
        def _():
            y = acc_ref[...] + bias_ref[...]
            if act == "relu":
                y = jnp.maximum(y, 0.0)
            elif act == "tanh":
                y = jnp.tanh(y)
            elif act == "leaky":
                y = jnp.where(y > 0, y, 0.01 * y)
            o_ref[...] = y
    return kernel


@functools.lru_cache(maxsize=None)
def _build_matmul(Mp, Kp, Np, tm, tk, tn, act):
    grid = (Mp // tm, Np // tn, Kp // tk)
    cost = pl.CostEstimate(flops=2 * Mp * Kp * Np, transcendentals=0,
                           bytes_accessed=Mp * Kp * 2 + Kp * Np * 2 + Mp * Np * 4)
    return pl.pallas_call(
        _mm_kernel(act),
        grid=grid,
        in_specs=[pl.BlockSpec((tm, tk), lambda i, j, k: (i, k)),
                  pl.BlockSpec((tk, tn), lambda i, j, k: (k, j)),
                  pl.BlockSpec((1, tn), lambda i, j, k: (0, j))],
        out_specs=pl.BlockSpec((tm, tn), lambda i, j, k: (i, j)),
        out_shape=jax.ShapeDtypeStruct((Mp, Np), jnp.float32),
        scratch_shapes=[pltpu.VMEM((tm, tn), jnp.float32)],
        compiler_params=pltpu.CompilerParams(
            dimension_semantics=("parallel", "parallel", "arbitrary"),
            vmem_limit_bytes=_VMEM_LIMIT),
        cost_estimate=cost,
    )


def pmatmul(a, b, bias=None, act="none"):
    """(M,K)@(K,N) + bias with fused activation (bf16 MXU, f32 accumulate)."""
    M, K = a.shape
    N = b.shape[1]
    tm = 256 if M > 256 else _round_up(M, 16)       # bf16 sublane multiple
    tn = 256 if N > 256 else _round_up(N, 128)
    tk = 512 if K > 512 else _round_up(K, 128)
    Mp, Kp, Np = _round_up(M, tm), _round_up(K, tk), _round_up(N, tn)
    a_p = _pad_to(a.astype(jnp.float32), Mp, Kp).astype(jnp.bfloat16)
    b_p = _pad_to(b.astype(jnp.float32), Kp, Np).astype(jnp.bfloat16)
    if bias is None:
        bias = jnp.zeros((N,), jnp.float32)
    bias_p = _pad_to(bias.reshape(1, N).astype(jnp.float32), 1, Np)
    out = _build_matmul(Mp, Kp, Np, tm, tk, tn, act)(a_p, b_p, bias_p)
    return out[:M, :N]


# ----------------------------------------------------------------------------
# Batched matmul + relu + row softmax (learned / adaptive adjacencies)
# ----------------------------------------------------------------------------

def _bmm_relu_softmax_kernel(n_cols, a_ref, b_ref, o_ref):
    # Kept f32 on the MXU: tiny (K<=12) and feeds a softmax adjacency.
    z = jnp.dot(a_ref[0], b_ref[0], preferred_element_type=jnp.float32)
    z = jnp.maximum(z, 0.0)
    col = jax.lax.broadcasted_iota(jnp.int32, z.shape, 1)
    z = jnp.where(col < n_cols, z, -jnp.inf)       # mask padded columns
    z = z - jnp.max(z, axis=1, keepdims=True)
    e = jnp.exp(z)
    o_ref[0] = e * pl.reciprocal(jnp.sum(e, axis=1, keepdims=True), approx=True)


@functools.lru_cache(maxsize=None)
def _build_bmm_relu_softmax(G, Mp, Kp, Np, n_cols):
    return pl.pallas_call(
        functools.partial(_bmm_relu_softmax_kernel, n_cols),
        grid=(G,),
        in_specs=[pl.BlockSpec((1, Mp, Kp), lambda g: (g, 0, 0)),
                  pl.BlockSpec((1, Kp, Np), lambda g: (g, 0, 0))],
        out_specs=pl.BlockSpec((1, Mp, Np), lambda g: (g, 0, 0)),
        out_shape=jax.ShapeDtypeStruct((G, Mp, Np), jnp.float32),
        compiler_params=pltpu.CompilerParams(
            dimension_semantics=("parallel",),
            vmem_limit_bytes=_VMEM_LIMIT),
    )


def batched_mm_relu_softmax(a, b):
    """softmax(relu(a[g] @ b[g]), axis=1) per leading index, one pallas_call."""
    G, M, K = a.shape
    N = b.shape[2]
    Mp, Kp, Np = _round_up(M, 8), _round_up(K, 128), _round_up(N, 128)
    a_p = jnp.pad(a.astype(jnp.float32), ((0, 0), (0, Mp - M), (0, Kp - K)))
    b_p = jnp.pad(b.astype(jnp.float32), ((0, 0), (0, Kp - K), (0, Np - N)))
    out = _build_bmm_relu_softmax(G, Mp, Kp, Np, N)(a_p, b_p)
    return out[:, :M, :N]


def pmatmul_relu_softmax(a, b):
    return batched_mm_relu_softmax(a[None], b[None])[0]


# ----------------------------------------------------------------------------
# Fused linear + gate:  adp = x@W+b ; out = act(g)*sig(adp) + prev*(1-sig(adp))
# ----------------------------------------------------------------------------

def _linear_gate_kernel(act):
    def kernel(x_ref, w_ref, b_ref, g_ref, p_ref, o_ref):
        adp = jnp.dot(x_ref[...], w_ref[...],
                      preferred_element_type=jnp.float32) + b_ref[...]
        s = jax.nn.sigmoid(adp)
        g = g_ref[...]
        if act == "tanh":
            g = jnp.tanh(g)
        elif act == "leaky":
            g = jnp.where(g > 0, g, 0.01 * g)
        elif act == "relu":
            g = jnp.maximum(g, 0.0)
        o_ref[...] = g * s + p_ref[...] * (1.0 - s)
    return kernel


@functools.lru_cache(maxsize=None)
def _build_linear_gate(Mp, Kp, Np, tm, act):
    return pl.pallas_call(
        _linear_gate_kernel(act),
        grid=(Mp // tm,),
        in_specs=[pl.BlockSpec((tm, Kp), lambda i: (i, 0)),
                  pl.BlockSpec((Kp, Np), lambda i: (0, 0)),
                  pl.BlockSpec((1, Np), lambda i: (0, 0)),
                  pl.BlockSpec((tm, Np), lambda i: (i, 0)),
                  pl.BlockSpec((tm, Np), lambda i: (i, 0))],
        out_specs=pl.BlockSpec((tm, Np), lambda i: (i, 0)),
        out_shape=jax.ShapeDtypeStruct((Mp, Np), jnp.float32),
        compiler_params=pltpu.CompilerParams(
            dimension_semantics=("parallel",),
            vmem_limit_bytes=_VMEM_LIMIT),
    )


def linear_gate(x, wT, b, gout, prev, act):
    M, K = x.shape
    N = wT.shape[1]
    tm = 256 if M > 256 else _round_up(M, 16)
    Mp = _round_up(M, tm)
    Kp, Np = _round_up(K, 128), _round_up(N, 128)
    out = _build_linear_gate(Mp, Kp, Np, tm, act)(
        _pad_to(x.astype(jnp.float32), Mp, Kp).astype(jnp.bfloat16),
        _pad_to(wT.astype(jnp.float32), Kp, Np).astype(jnp.bfloat16),
        _pad_to(b.reshape(1, N).astype(jnp.float32), 1, Np),
        _pad_to(gout.astype(jnp.float32), Mp, Np),
        _pad_to(prev.astype(jnp.float32), Mp, Np))
    return out[:M, :N]


# ----------------------------------------------------------------------------
# Fused 3-layer tanh MLP (encoder fc0 -> fc1 -> fc2), bf16 MXU operands
# ----------------------------------------------------------------------------

def _mlp3_kernel(x_ref, w0_ref, b0_ref, w1_ref, b1_ref, w2_ref, b2_ref, o_ref):
    h = jnp.tanh(jnp.dot(x_ref[...], w0_ref[...],
                         preferred_element_type=jnp.float32) + b0_ref[...])
    h = jnp.tanh(jnp.dot(h.astype(jnp.bfloat16), w1_ref[...],
                         preferred_element_type=jnp.float32) + b1_ref[...])
    o_ref[...] = jnp.tanh(jnp.dot(h.astype(jnp.bfloat16), w2_ref[...],
                                  preferred_element_type=jnp.float32) + b2_ref[...])


@functools.lru_cache(maxsize=None)
def _build_mlp3(Mp, K0, N0, N1, N2):
    return pl.pallas_call(
        _mlp3_kernel,
        grid=(1,),   # M is tiny (== num_nodes); no row tiling needed
        in_specs=[pl.BlockSpec((Mp, K0), lambda i: (0, 0)),
                  pl.BlockSpec((K0, N0), lambda i: (0, 0)),
                  pl.BlockSpec((1, N0), lambda i: (0, 0)),
                  pl.BlockSpec((N0, N1), lambda i: (0, 0)),
                  pl.BlockSpec((1, N1), lambda i: (0, 0)),
                  pl.BlockSpec((N1, N2), lambda i: (0, 0)),
                  pl.BlockSpec((1, N2), lambda i: (0, 0))],
        out_specs=pl.BlockSpec((Mp, N2), lambda i: (0, 0)),
        out_shape=jax.ShapeDtypeStruct((Mp, N2), jnp.float32),
        compiler_params=pltpu.CompilerParams(
            dimension_semantics=("arbitrary",),
            vmem_limit_bytes=_VMEM_LIMIT),
    )


def fused_mlp3(x, p0, p1, p2):
    M, K = x.shape
    n0, n1, n2 = p0["wT"].shape[1], p1["wT"].shape[1], p2["wT"].shape[1]
    Mp = _round_up(M, 16)
    K0 = _round_up(K, 128)
    N0, N1, N2 = _round_up(n0, 128), _round_up(n1, 128), _round_up(n2, 128)
    out = _build_mlp3(Mp, K0, N0, N1, N2)(
        _pad_to(x.astype(jnp.float32), Mp, K0).astype(jnp.bfloat16),
        _pad_to(p0["wT"].astype(jnp.float32), K0, N0).astype(jnp.bfloat16),
        _pad_to(p0["b"].reshape(1, -1).astype(jnp.float32), 1, N0),
        _pad_to(p1["wT"].astype(jnp.float32), N0, N1).astype(jnp.bfloat16),
        _pad_to(p1["b"].reshape(1, -1).astype(jnp.float32), 1, N1),
        _pad_to(p2["wT"].astype(jnp.float32), N1, N2).astype(jnp.bfloat16),
        _pad_to(p2["b"].reshape(1, -1).astype(jnp.float32), 1, N2))
    return out[:M, :n2]


# ----------------------------------------------------------------------------
# Fused GAT attention: scores, leaky(0.2), mask, softmax, head aggregation,
# head mean + bias -- grid over heads, VMEM accumulator.
# ----------------------------------------------------------------------------

def _gat_attn_kernel(nheads, xw_ref, asrc_ref, adst_ref, mask_ref, bias_ref,
                     o_ref, acc_ref):
    h = pl.program_id(0)

    @pl.when(h == 0)
    def _():
        acc_ref[...] = jnp.zeros_like(acc_ref)

    nn = adst_ref.shape[1]
    asrc_row = jnp.sum(asrc_ref[0], axis=0, keepdims=True)     # (1, Nnp)
    adst_col = jnp.sum(adst_ref[0], axis=1, keepdims=True)     # (Nnp, 1)
    e = (jnp.broadcast_to(adst_col, (nn, nn)) +
         jnp.broadcast_to(asrc_row, (nn, nn)))
    e = jnp.where(e > 0, e, 0.2 * e)                           # GAT leaky slope
    e = jnp.where(mask_ref[...] > 0, e, -1e30)
    e = e - jnp.max(e, axis=1, keepdims=True)
    p = jnp.exp(e)
    p = p * pl.reciprocal(jnp.sum(p, axis=1, keepdims=True), approx=True)
    acc_ref[...] += jnp.dot(p.astype(jnp.bfloat16), xw_ref[0],
                            preferred_element_type=jnp.float32)

    @pl.when(h == nheads - 1)
    def _():
        o_ref[...] = acc_ref[...] * (1.0 / nheads) + bias_ref[...]


@functools.lru_cache(maxsize=None)
def _build_gat_attn(H, Nnp, Dp):
    return pl.pallas_call(
        functools.partial(_gat_attn_kernel, H),
        grid=(H,),
        in_specs=[pl.BlockSpec((1, Nnp, Dp), lambda h: (h, 0, 0)),
                  pl.BlockSpec((1, 8, Nnp), lambda h: (h, 0, 0)),
                  pl.BlockSpec((1, Nnp, 128), lambda h: (h, 0, 0)),
                  pl.BlockSpec((Nnp, Nnp), lambda h: (0, 0)),
                  pl.BlockSpec((1, Dp), lambda h: (0, 0))],
        out_specs=pl.BlockSpec((Nnp, Dp), lambda h: (0, 0)),
        out_shape=jax.ShapeDtypeStruct((Nnp, Dp), jnp.float32),
        scratch_shapes=[pltpu.VMEM((Nnp, Dp), jnp.float32)],
        compiler_params=pltpu.CompilerParams(
            dimension_semantics=("arbitrary",),
            vmem_limit_bytes=_VMEM_LIMIT),
    )


def gat_conv(x, adj_mask, p, heads):
    """PyG-style GATConv (concat=False, self-loops in mask, slope 0.2).
    Projection via pmatmul; attention + aggregation fused in one kernel."""
    Nn = x.shape[0]
    Dh = p["att_src"].shape[1]
    xw = pmatmul(x, p["wT"]).reshape(Nn, heads, Dh)
    a_src = jnp.sum(xw * p["att_src"][None], axis=-1)    # (Nn, H)
    a_dst = jnp.sum(xw * p["att_dst"][None], axis=-1)    # (Nn, H)
    Nnp, Dp = _round_up(Nn, 128), _round_up(Dh, 128)
    xw_p = jnp.zeros((heads, Nnp, Dp), jnp.bfloat16)
    xw_p = xw_p.at[:, :Nn, :Dh].set(
        jnp.transpose(xw, (1, 0, 2)).astype(jnp.bfloat16))
    asrc_p = jnp.zeros((heads, 8, Nnp), jnp.float32).at[:, 0, :Nn].set(a_src.T)
    adst_p = jnp.zeros((heads, Nnp, 128), jnp.float32).at[:, :Nn, 0].set(a_dst.T)
    mask_p = jnp.zeros((Nnp, Nnp), jnp.float32).at[:Nn, :Nn].set(
        adj_mask.astype(jnp.float32))
    bias_p = jnp.zeros((1, Dp), jnp.float32).at[0, :Dh].set(p["bias"])
    out = _build_gat_attn(heads, Nnp, Dp)(xw_p, asrc_p, adst_p, mask_p, bias_p)
    return out[:Nn, :Dh]


# ----------------------------------------------------------------------------
# Temporal block: pad(3,3) -> Conv(1,5) -> LeakyReLU -> Conv(1,3) -> Tanh
# rewritten as two block-Toeplitz matmuls, two convs batched per launch.
# ----------------------------------------------------------------------------

def _temporal_pair_kernel(x_ref, w5_ref, b5_ref, w3_ref, b3_ref, o_ref):
    h = jnp.dot(x_ref[0], w5_ref[0],
                preferred_element_type=jnp.float32) + b5_ref[0]
    h = jnp.where(h > 0, h, 0.01 * h)
    y = jnp.dot(h.astype(jnp.bfloat16), w3_ref[0],
                preferred_element_type=jnp.float32) + b3_ref[0]
    o_ref[0] = jnp.tanh(y)


@functools.lru_cache(maxsize=None)
def _build_temporal_pair(P, Rp, tm, Lin, Lmid, Lout):
    return pl.pallas_call(
        _temporal_pair_kernel,
        grid=(P, Rp // tm),
        in_specs=[pl.BlockSpec((1, tm, Lin), lambda p, i: (p, i, 0)),
                  pl.BlockSpec((1, Lin, Lmid), lambda p, i: (p, 0, 0)),
                  pl.BlockSpec((1, 1, Lmid), lambda p, i: (p, 0, 0)),
                  pl.BlockSpec((1, Lmid, Lout), lambda p, i: (p, 0, 0)),
                  pl.BlockSpec((1, 1, Lout), lambda p, i: (p, 0, 0))],
        out_specs=pl.BlockSpec((1, tm, Lout), lambda p, i: (p, i, 0)),
        out_shape=jax.ShapeDtypeStruct((P, Rp, Lout), jnp.float32),
        compiler_params=pltpu.CompilerParams(
            dimension_semantics=("parallel", "parallel"),
            vmem_limit_bytes=_VMEM_LIMIT),
    )


def _toeplitz(p, C, L):
    """Build block-Toeplitz weights for the flattened (time,channel) layout."""
    Lpad, Lmid = L + 6, L + 2
    w5 = jnp.zeros((Lpad * C, Lmid * C), jnp.float32)
    for t in range(Lmid):
        w5 = jax.lax.dynamic_update_slice(w5, p["w5T"], (t * C, t * C))
    w3 = jnp.zeros((Lmid * C, L * C), jnp.float32)
    for t in range(L):
        w3 = jax.lax.dynamic_update_slice(w3, p["w3T"], (t * C, t * C))
    b5 = jnp.tile(p["b5"].reshape(1, C), (1, Lmid))
    b3 = jnp.tile(p["b3"].reshape(1, C), (1, L))
    return w5, b5, w3, b3


def temporal_block_pair(xa, xb, pa, pb):
    """Two temporal conv stacks (different weights, same input shape) in one
    pallas_call via a leading grid axis."""
    # TODO(synk): nn.Dropout between the two convs skipped (inference forward).
    B, C, N, L = xa.shape
    Lpad = L + 6
    Lin = _round_up(Lpad * C, 128)
    Lmid = _round_up((L + 2) * C, 128)
    Lout = _round_up(L * C, 128)
    R = B * N
    tm = 256 if R > 256 else _round_up(R, 16)
    Rp = _round_up(R, tm)

    def flat(x):
        xp = jnp.pad(x, ((0, 0), (0, 0), (0, 0), (3, 3)), mode="edge")
        xf = jnp.transpose(xp, (0, 2, 3, 1)).reshape(R, Lpad * C)
        return _pad_to(xf.astype(jnp.float32), Rp, Lin)

    x_in = jnp.stack([flat(xa), flat(xb)], axis=0).astype(jnp.bfloat16)

    w5s, b5s, w3s, b3s = [], [], [], []
    for p in (pa, pb):
        w5, b5, w3, b3 = _toeplitz(p, C, L)
        w5s.append(_pad_to(w5, Lin, Lmid))
        b5s.append(_pad_to(b5, 1, Lmid))
        w3s.append(_pad_to(w3, Lmid, Lout))
        b3s.append(_pad_to(b3, 1, Lout))
    w5b = jnp.stack(w5s, 0).astype(jnp.bfloat16)
    b5b = jnp.stack(b5s, 0)
    w3b = jnp.stack(w3s, 0).astype(jnp.bfloat16)
    b3b = jnp.stack(b3s, 0)

    out = _build_temporal_pair(2, Rp, tm, Lin, Lmid, Lout)(
        x_in, w5b, b5b, w3b, b3b)

    def unflat(o):
        y = o[:R, :L * C].reshape(B, N, L, C)
        return jnp.transpose(y, (0, 3, 1, 2))

    return unflat(out[0]), unflat(out[1])


# ----------------------------------------------------------------------------
# NN building blocks
# ----------------------------------------------------------------------------

def linear(x, p, act="none"):
    return pmatmul(x, p["wT"], p["b"], act=act)


def conv1x1(x, p, act="none"):
    B, C, N, T = x.shape
    O = p["wT"].shape[1]
    xf = jnp.transpose(x, (0, 2, 3, 1)).reshape(B * N * T, C)
    y = pmatmul(xf, p["wT"], p["b"], act=act)
    return jnp.transpose(y.reshape(B, N, T, O), (0, 3, 1, 2))


def conv_full_time(x, p, act="none"):
    """Conv2d with kernel (1, T) -- reduces the whole time axis."""
    B, C, N, T = x.shape
    O = p["wT"].shape[1]
    xf = jnp.transpose(x, (0, 2, 1, 3)).reshape(B * N, C * T)
    y = pmatmul(xf, p["wT"], p["b"], act=act)
    return jnp.transpose(y.reshape(B, N, O), (0, 2, 1))[..., None]


def nconv(x, A):
    # einsum('bcnt,nm->bcmt')
    B, C, N, T = x.shape
    M = A.shape[1]
    xf = jnp.transpose(x, (0, 1, 3, 2)).reshape(B * C * T, N)
    y = pmatmul(xf, A)
    return jnp.transpose(y.reshape(B, C, T, M), (0, 1, 3, 2))


def diffusion_gcn(x, supports, p):
    out = [x]
    for a in supports:                 # order == 1
        out.append(nconv(x, a))
    h = jnp.concatenate(out, axis=1)
    # TODO(synk): F.dropout after the 1x1 conv skipped (inference-mode forward).
    return conv1x1(h, p)


def learned_apply(learned, adp):
    # learned (N,N) batched-matmul with adp (B,N,F)
    B, N, F = adp.shape
    x2 = jnp.transpose(adp, (1, 0, 2)).reshape(N, B * F)
    y = pmatmul(learned, x2)
    return jnp.transpose(y.reshape(N, B, F), (1, 0, 2))


# ----------------------------------------------------------------------------
# Creator / Encoder / IS_BLOCK / IS_Tree / ISGCN_WEEK forward
# ----------------------------------------------------------------------------

def _gate_stage(bp, lin_key, learned, feat, gout, prev, act, N, B):
    F = feat.shape[1]
    la = learned_apply(learned, feat.reshape(B, N, F)).reshape(B * N, F)
    # TODO(synk): F.dropout(p=0.1) on the adaptive input skipped (deterministic forward).
    return linear_gate(la, bp[lin_key]["wT"], bp[lin_key]["b"], gout, prev, act)


def creator_branch(bp, learned, x, adj_mask, N, B, heads4):
    gdim = bp["linear_2"]["wT"].shape[1]
    gout1 = gat_conv(x, adj_mask, bp["gconv1"], 3)
    origin = linear(x, bp["origin"])
    out1 = _gate_stage(bp, "linear_1", learned, x, gout1, origin, "tanh", N, B)

    t1 = jnp.tanh(out1)
    gout2 = gat_conv(t1, adj_mask, bp["gconv2"], 3)
    out2 = _gate_stage(bp, "linear_2", learned, t1, gout2, out1, "leaky", N, B)

    r2 = jnp.maximum(out2, 0.0)
    gout3 = gat_conv(r2, adj_mask, bp["gconv3"], 3)
    out3 = _gate_stage(bp, "linear_3", learned, r2, gout3, out2, "relu", N, B)

    r3 = jnp.maximum(out3, 0.0)
    gout4 = gat_conv(r3, adj_mask, bp["gconv4"], heads4)
    out4 = _gate_stage(bp, "linear_4", learned, r3, gout4, out3, "relu", N, B)
    return out4.reshape(B, N, gdim)


def creator_forward(cp, learned_sp, learned_dtw, x, adj_mask, dtw_mask, N, B):
    F = x.shape[1]
    x = linear(x, cp["seq_linear"]) + x
    sp_out = creator_branch(cp["sp"], learned_sp, x, adj_mask, N, B, heads4=1)
    x = linear(x, cp["seq_linear"]) + x
    dtw_out = creator_branch(cp["dtw"], learned_dtw, x, dtw_mask, N, B, heads4=3)
    cell = jnp.concatenate([sp_out, dtw_out], axis=2).reshape(B * N, -1)
    out = linear(cell, cp["output_linear"])
    return out.reshape(B, N, F)[:, None, :, :]            # (B,1,N,F)


def encoder_forward(ep, learned_sp, learned_dtw, x1, adj_mask, dtw_mask, N, key):
    B = x1.shape[0]
    inp = x1.reshape(B * N, -1)
    output = creator_forward(ep["creator"], learned_sp, learned_dtw,
                             inp, adj_mask, dtw_mask, N, B)
    out1 = conv1x1(output, ep["start_conv"])              # (B,C,N,F)
    xs = jnp.sum(out1[-1], axis=2).T                       # == [-1].sum(2).permute(1,0)
    xs = fused_mlp3(xs, ep["fc0"], ep["fc1"], ep["fc2"])
    # TODO(synk): F.dropout before the gumbel softmax skipped (inference forward).
    logits = jax.nn.log_softmax(xs, axis=-1)
    u = jax.random.uniform(key, logits.shape)
    g = -jnp.log(-jnp.log(u + 1e-20) + 1e-20)
    y_soft = jax.nn.softmax((logits + g) / 0.5, axis=-1)
    hard = jax.nn.one_hot(jnp.argmax(y_soft, axis=-1), logits.shape[-1],
                          dtype=jnp.float32)
    learn_adj = jnp.where(jnp.eye(N, dtype=bool), 0.0, hard)
    return learn_adj, output


def is_block_forward(bp, x, x_1, adj_mask, dtw_mask, N, keys):
    cp = bp["encoder"]["creator"]
    # Learned adjacencies depend only on parameters -> computed once per IS
    # block; sp and dtw batched into a single relu-softmax pallas_call.
    learned = batched_mm_relu_softmax(
        jnp.stack([cp["sp"]["source_embed"], cp["dtw"]["source_embed"]], 0),
        jnp.stack([cp["sp"]["target_embed"], cp["dtw"]["target_embed"]], 0))
    learned_sp, learned_dtw = learned[0], learned[1]

    def enc(inp, k):
        return encoder_forward(bp["encoder"], learned_sp, learned_dtw,
                               inp, adj_mask, dtw_mask, N, k)

    x_even, x_odd = x[..., ::2], x[..., 1::2]
    x_1even = x_1[..., ::2]

    # conv1/conv2 operate on independent same-shape inputs -> one launch
    x1, x2 = temporal_block_pair(x_even, x_odd, bp["conv1"], bp["conv2"])

    adj, output = enc(x_1even, keys[0])
    x1 = x1 + diffusion_gcn(x1, [adj], bp["diffusion"])
    d = x_odd * jnp.tanh(x1)

    adj, output = enc(output, keys[1])
    x2 = x2 + diffusion_gcn(x2, [adj], bp["diffusion"])
    c = x_even * jnp.tanh(x2)

    # conv3/conv4 likewise batched (inputs c and d are both available here)
    x3, x4 = temporal_block_pair(c, d, bp["conv3"], bp["conv4"])

    adj, output = enc(output, keys[2])
    x3 = x3 + diffusion_gcn(x3, [adj], bp["diffusion"])
    x_odd_update = d - x3

    adj, output1 = enc(output, keys[3])
    x4 = x4 + diffusion_gcn(x4, [adj], bp["diffusion"])
    x_even_update = c + x4

    output = jnp.concatenate([output, output1], axis=-1)
    return x_even_update, x_odd_update, adj, output


def interleave(even, odd):
    B, C, N, T = even.shape
    return jnp.stack([even, odd], axis=-1).reshape(B, C, N, 2 * T)


def tree_forward(tp, x, x1, adj_mask, dtw_mask, N, key):
    ks = jax.random.split(key, 12)
    e1, o1, adj1, x2 = is_block_forward(tp["IS1"], x, x1, adj_mask, dtw_mask, N, ks[0:4])
    e2, o2, adj2, x3 = is_block_forward(tp["IS2"], e1, x2, adj_mask, dtw_mask, N, ks[4:8])
    e3, o3, adj3, _ = is_block_forward(tp["IS3"], o1, x3, adj_mask, dtw_mask, N, ks[8:12])
    c1 = interleave(e2, o2)
    c2 = interleave(e3, o3)
    c0 = interleave(c1, c2)
    adj = adj1 * tp["a"] + adj2 * tp["b"] + adj3 * tp["c"]
    return c0, adj


def isgcn_week_forward(params, x_in, adj_mask, dtw_mask, pre_graph, key):
    N = x_in.shape[2]
    x = conv1x1(x_in, params["start_conv"])
    skip = x
    x, dadj = tree_forward(params["tree"], x, x_in, adj_mask, dtw_mask, N, key)
    x = skip + x
    adaptive = pmatmul_relu_softmax(params["nodevec1"], params["nodevec2"])
    a = params["a"]
    adj = a * adaptive + (1.0 - a) * dadj
    supports = list(pre_graph) + [adj]
    gcn = diffusion_gcn(x, supports, params["diffusion"])
    x = gcn + x
    x = conv1x1(x, params["Conv1"], act="relu")
    x = conv_full_time(x, params["Conv2"], act="relu")
    x = conv1x1(x, params["Conv3"])
    x = jnp.squeeze(x)
    return x[..., None]


# ----------------------------------------------------------------------------
# Deterministic parameter initialization (weights stored pre-transposed)
# ----------------------------------------------------------------------------

def _normal(key, shape, scale=0.1):
    return scale * jax.random.normal(key, shape, jnp.float32)


def init_linear(key, in_f, out_f):
    k1, k2 = jax.random.split(key)
    return {"wT": _normal(k1, (in_f, out_f)), "b": _normal(k2, (out_f,))}


def init_gat(key, in_f, out_f, heads):
    ks = jax.random.split(key, 4)
    return {"wT": _normal(ks[0], (in_f, heads * out_f)),
            "att_src": _normal(ks[1], (heads, out_f)),
            "att_dst": _normal(ks[2], (heads, out_f)),
            "bias": _normal(ks[3], (out_f,))}


def init_branch(key, F, gdim, N, heads4):
    ks = jax.random.split(key, 11)
    return {"origin": init_linear(ks[0], F, gdim),
            "source_embed": _normal(ks[1], (N, 12)),
            "target_embed": _normal(ks[2], (12, N)),
            "linear_1": init_linear(ks[3], F, gdim),
            "linear_2": init_linear(ks[4], gdim, gdim),
            "linear_3": init_linear(ks[5], gdim, gdim),
            "linear_4": init_linear(ks[6], gdim, gdim),
            "gconv1": init_gat(ks[7], F, gdim, 3),
            "gconv2": init_gat(ks[8], gdim, gdim, 3),
            "gconv3": init_gat(ks[9], gdim, gdim, 3),
            "gconv4": init_gat(ks[10], gdim, gdim, heads4)}


def init_creator(key, F, N, gdim=16):
    ks = jax.random.split(key, 4)
    return {"seq_linear": init_linear(ks[0], F, F),
            "output_linear": init_linear(ks[1], 2 * gdim, F),
            "sp": init_branch(ks[2], F, gdim, N, heads4=1),
            "dtw": init_branch(ks[3], F, gdim, N, heads4=3)}


def init_encoder(key, C, N, F):
    ks = jax.random.split(key, 5)
    return {"fc0": init_linear(ks[0], C, N),
            "fc1": init_linear(ks[1], N, 2 * N),
            "fc2": init_linear(ks[2], 2 * N, N),
            "start_conv": init_linear(ks[3], 1, C),
            "creator": init_creator(ks[4], F, N)}


def init_temporal(key, C):
    ks = jax.random.split(key, 4)
    # weights stored pre-flattened time-major: row index = dt*C + c, col = out
    return {"w5T": _normal(ks[0], (5 * C, C)), "b5": _normal(ks[1], (1, C)),
            "w3T": _normal(ks[2], (3 * C, C)), "b3": _normal(ks[3], (1, C))}


def init_block(key, C, N, F):
    ks = jax.random.split(key, 6)
    return {"conv1": init_temporal(ks[0], C),
            "conv2": init_temporal(ks[1], C),
            "conv3": init_temporal(ks[2], C),
            "conv4": init_temporal(ks[3], C),
            "encoder": init_encoder(ks[4], C, N, F),
            "diffusion": init_linear(ks[5], 2 * C, C)}


def init_model(key, N, C, seq_len, nw, pre_adj0, apt_size=10):
    T = 12 * nw
    F = (seq_len // 2) * nw
    ks = jax.random.split(key, 13)
    # svd_init of nodevec1 / nodevec2 from pre_adj[0]
    U, S, Vt = jnp.linalg.svd(pre_adj0)
    k = min(apt_size, N)
    nodevec1 = U[:, :k] @ jnp.diag(jnp.sqrt(S[:k]))
    nodevec2 = jnp.diag(jnp.sqrt(S[:k])) @ Vt[:k, :]
    # note: self.W (12, N) is declared but never used in forward -> omitted.
    return {"nodevec1": nodevec1, "nodevec2": nodevec2,
            "a": jax.random.uniform(ks[0], (), jnp.float32),
            "start_conv": init_linear(ks[1], 1, C),
            "tree": {"a": jax.random.uniform(ks[2], (), jnp.float32),
                     "b": jax.random.uniform(ks[3], (), jnp.float32),
                     "c": jax.random.uniform(ks[4], (), jnp.float32),
                     "IS1": init_block(ks[5], C, N, F),
                     "IS2": init_block(ks[6], C, N, F),
                     "IS3": init_block(ks[7], C, N, F)},
            "diffusion": init_linear(ks[8], 3 * C, C),
            "Conv1": init_linear(ks[9], C, 256),
            "Conv2": {"wT": _normal(ks[10], (256 * T, 512)), "b": _normal(ks[11], (512,))},
            "Conv3": init_linear(ks[12], 512, 12)}


# ----------------------------------------------------------------------------
# main
# ----------------------------------------------------------------------------

if __name__ == "__main__":
    key = jax.random.PRNGKey(0)
    B, N, C = 2, 8, 4                 # batch, num_nodes, channels
    seq_len, nw = 12, 1               # seq_len, num_of_weeks
    T = 12 * nw
    k_param, k_in, k_gumbel = jax.random.split(key, 3)

    # deterministic pre-adjacency (ring + self loops, row-normalized)
    eye = jnp.eye(N, dtype=jnp.float32)
    ring = eye + jnp.roll(eye, 1, axis=1) + jnp.roll(eye, -1, axis=1)
    pre_adj0 = ring / jnp.sum(ring, axis=1, keepdims=True)

    params = init_model(k_param, N, C, seq_len, nw, pre_adj0)

    # edge_index-style graphs over the N physical nodes
    idx = jnp.arange(N)
    adj_edges = jnp.stack([jnp.concatenate([idx, (idx + 1) % N]),
                           jnp.concatenate([(idx + 1) % N, idx])])
    dtw_edges = jnp.stack([jnp.concatenate([idx, (idx + 2) % N]),
                           jnp.concatenate([(idx + 2) % N, idx])])

    # dense adjacency masks over the flattened B*N node set (PyG adds
    # self-loops for every node of the input tensor)
    def dense_mask(edge_index, total):
        m = jnp.zeros((total, total), bool)
        m = m.at[edge_index[1], edge_index[0]].set(True)
        return m | jnp.eye(total, dtype=bool)

    adj_mask = dense_mask(adj_edges, B * N)
    dtw_mask = dense_mask(dtw_edges, B * N)

    x_in = jax.random.normal(k_in, (B, 1, N, T), jnp.float32)

    out = isgcn_week_forward(params, x_in, adj_mask, dtw_mask, [pre_adj0], k_gumbel)
    out = jax.block_until_ready(out)
    assert out.shape == (B, 12, N, 1), out.shape
    assert bool(jnp.all(jnp.isfinite(out)))
    print("KERNEL_OK")
</pallas_src>

<mosaic_0001>
module attributes {stable_mosaic.version = 11 : i64} {
  func.func @kernel(%arg0: i32, %arg1: i32, %arg2: i32, %arg3: memref<192x128xbf16, #tpu.memory_space<vmem>>, %arg4: memref<128x128xbf16, #tpu.memory_space<vmem>>, %arg5: memref<1x128xf32, #tpu.memory_space<vmem>>, %arg6: memref<192x128xf32, #tpu.memory_space<vmem>>, %arg7: memref<192x128xf32, #tpu.memory_space<vmem>>) attributes {dimension_semantics = [#tpu.dimension_semantics<parallel>, #tpu.dimension_semantics<parallel>, #tpu.dimension_semantics<arbitrary>], iteration_bounds = array<i64: 1, 1, 1>, scalar_prefetch = 0 : i64, scratch_operands = 1 : i64, tpu.core_type = #tpu.core_type<tc>, window_params = [{transform_indices = @transform_0, window_bounds = array<i64: 192, 128>}, {transform_indices = @transform_1, window_bounds = array<i64: 128, 128>}, {transform_indices = @transform_2, window_bounds = array<i64: 1, 128>}, {transform_indices = @transform_3, window_bounds = array<i64: 192, 128>}]} {
    %c0_i32 = arith.constant 0 : i32
    %0 = arith.cmpi eq, %arg2, %c0_i32 : i32
    %1 = arith.extui %0 : i1 to i32
    %c0_i32_0 = arith.constant 0 : i32
    %2 = arith.cmpi ne, %1, %c0_i32_0 : i32
    scf.if %2 {
      %cst_10 = arith.constant 0.000000e+00 : f32
      %12 = vector.broadcast %cst_10 : f32 to vector<192x128xf32>
      %c0_11 = arith.constant 0 : index
      %c0_12 = arith.constant 0 : index
      %13 = vector.load %arg7[%c0_11, %c0_12] : memref<192x128xf32, #tpu.memory_space<vmem>>, vector<192x128xf32>
      tpu.vector_store %arg7[%c0_11, %c0_12], %12 {strides = array<i32>} : memref<192x128xf32, #tpu.memory_space<vmem>>, vector<192x128xf32>,
    } else {
    }
    %c0 = arith.constant 0 : index
    %c0_1 = arith.constant 0 : index
    %3 = vector.load %arg7[%c0, %c0_1] : memref<192x128xf32, #tpu.memory_space<vmem>>, vector<192x128xf32>
    %c0_2 = arith.constant 0 : index
    %c0_3 = arith.constant 0 : index
    %4 = vector.load %arg3[%c0_2, %c0_3] : memref<192x128xbf16, #tpu.memory_space<vmem>>, vector<192x128xbf16>
    %c0_4 = arith.constant 0 : index
    %c0_5 = arith.constant 0 : index
    %5 = vector.load %arg4[%c0_4, %c0_5] : memref<128x128xbf16, #tpu.memory_space<vmem>>, vector<128x128xbf16>
    %cst = arith.constant dense<0.000000e+00> : vector<192x128xf32>
    %6 = tpu.matmul %4, %5, %cst {dimension_numbers = #tpu.dot_dimension_numbers<[1], [0], [0], [1], [0, 0, 1, 1], [], []>} : vector<192x128xbf16>, vector<128x128xbf16>, vector<192x128xf32> -> vector<192x128xf32>
    %7 = arith.addf %3, %6 : vector<192x128xf32>
    %c0_6 = arith.constant 0 : index
    %c0_7 = arith.constant 0 : index
    %8 = vector.load %arg7[%c0_6, %c0_7] : memref<192x128xf32, #tpu.memory_space<vmem>>, vector<192x128xf32>
    tpu.vector_store %arg7[%c0_6, %c0_7], %7 {strides = array<i32>} : memref<192x128xf32, #tpu.memory_space<vmem>>, vector<192x128xf32>,
    %c0_i32_8 = arith.constant 0 : i32
    %9 = arith.cmpi eq, %arg2, %c0_i32_8 : i32
    %10 = arith.extui %9 : i1 to i32
    %c0_i32_9 = arith.constant 0 : i32
    %11 = arith.cmpi ne, %10, %c0_i32_9 : i32
    scf.if %11 {
      %c0_10 = arith.constant 0 : index
      %c0_11 = arith.constant 0 : index
      %12 = vector.load %arg7[%c0_10, %c0_11] : memref<192x128xf32, #tpu.memory_space<vmem>>, vector<192x128xf32>
      %c0_12 = arith.constant 0 : index
      %c0_13 = arith.constant 0 : index
      %13 = vector.load %arg5[%c0_12, %c0_13] : memref<1x128xf32, #tpu.memory_space<vmem>>, vector<1x128xf32>
      %14 = vector.broadcast %13 : vector<1x128xf32> to vector<192x128xf32>
      %15 = arith.addf %12, %14 : vector<192x128xf32>
      %c0_14 = arith.constant 0 : index
      %c0_15 = arith.constant 0 : index
      %16 = vector.load %arg6[%c0_14, %c0_15] : memref<192x128xf32, #tpu.memory_space<vmem>>, vector<192x128xf32>
      tpu.vector_store %arg6[%c0_14, %c0_15], %15 {strides = array<i32>} : memref<192x128xf32, #tpu.memory_space<vmem>>, vector<192x128xf32>,
    } else {
    }
    return
  }
  func.func @transform_0(%arg0: i32, %arg1: i32, %arg2: i32) -> (i32, i32) {
    %c0_i32 = arith.constant 0 : i32
    return %arg0, %arg2 : i32, i32
  }
  func.func @transform_1(%arg0: i32, %arg1: i32, %arg2: i32) -> (i32, i32) {
    %c0_i32 = arith.constant 0 : i32
    return %arg2, %arg1 : i32, i32
  }
  func.func @transform_2(%arg0: i32, %arg1: i32, %arg2: i32) -> (i32, i32) {
    %c0_i32 = arith.constant 0 : i32
    %c0_i32_0 = arith.constant 0 : i32
    return %c0_i32, %arg1 : i32, i32
  }
  func.func @transform_3(%arg0: i32, %arg1: i32, %arg2: i32) -> (i32, i32) {
    %c0_i32 = arith.constant 0 : i32
    return %arg0, %arg1 : i32, i32
  }
}

</mosaic_0001>

<bundles_post_ra>
// kernel: tpu_custom_call.1
= control target key start
LH: loop header
LB: loop body
LE: loop exit
PB: predicated region body
PF: predicated region fallthrough
CT: control target
= control target key end

     0   :  { %8 = vsyncpa [#allocation4], 0  ;;  %s788_s0 = inlined_call_operand.hbm [shape: bf16[192,128], index: 0, kind: input, shape index: {}]   ;;  %s789_s1 = inlined_call_operand.hbm [shape: bf16[128,128], index: 1, kind: input, shape index: {}]   ;;  %s790_s2 = inlined_call_operand.vmem [shape: f32[1,128], index: 2, kind: input, shape index: {}]   ;;  %s791_s3 = inlined_call_operand.hbm [shape: f32[192,128], index: 3, kind: output, shape index: {}]  }
   0x1   :  { %9 = vsyncpa [#allocation7], 0 }
   0x2   :  { %10 = vsyncpa [#allocation5], 0  ;;  %s723_s12 = smov [#allocation3]  }
   0x3   :  { %s16_s13 = sshll.u32 %s723_s12, 4  ;;  %s17_s13 = int_to_ptr.vmem [resolvable:$true] %s16_s13 }
   0x4   :  { %s665_s14 = scalar_lea.vmem %s17_s13, 1536  ;;  %p670_p1 = scmp.lt.s32.totalorder %s17_s13, %s17_s13 }
   0x5   :  { %p666_p0 = scmp.ne.s32.totalorder %s17_s13, %s665_s14  ;;  %p671_p2 = scmp.lt.s32.totalorder %s665_s14, %s665_s14 }
   0x7   :  { %p672_p3 = por %p671_p2, %p670_p1 }
   0x9   :  { %p673_p4 = pnand %p672_p3, %p666_p0 }
   0xb   :  { %676 = shalt.err (!%p673_p4)
}
   0xc   :  { %s724_s15 = smov 64   ;;  %s725_s16 = smov 4  }
   0xd   :  { %22 = dma.hbm_to_vmem [thread:$0]  %s788_s0, 1536, %s17_s13, [#allocation4], %s724_s15, %s724_s15, %s725_s16  }
   0xe   :  { %s726_s19 = smov [#allocation6]  }
   0xf   :  { %s28_s20 = sshll.u32 %s726_s19, 4  ;;  %s29_s20 = int_to_ptr.vmem [resolvable:$true] %s28_s20 }
  0x10   :  { %s685_s21 = scalar_lea.vmem %s29_s20, 1024  ;;  %p690_p6 = scmp.lt.s32.totalorder %s29_s20, %s29_s20 }
  0x11   :  { %p686_p5 = scmp.ne.s32.totalorder %s29_s20, %s685_s21  ;;  %p691_p7 = scmp.lt.s32.totalorder %s685_s21, %s685_s21 }
  0x13   :  { %p692_p8 = por %p691_p7, %p690_p6 }
  0x15   :  { %p693_p9 = pnand %p692_p8, %p686_p5 }
  0x17   :  { %696 = shalt.err (!%p693_p9)
}
  0x18   :  { %34 = dma.hbm_to_vmem [thread:$0]  %s789_s1, 1024, %s29_s20, [#allocation7], %s724_s15, %s724_s15, %s725_s16  }
  0x19   :  { %717 = dma.done.wait [#allocation4], 1536  }
  0x1a   :  { %718 = vsyncadd [#allocation4], 4294965760 }
  0x1b   :  { %719 = dma.done.wait [#allocation7], 1024  }
  0x1c   :  { %720 = vsyncadd [#allocation7], 4294966272  ;;  %v637_v0 = vld [vmem:[#allocation6 + $0x38] sm:$0xff]   ;;  %v638_v1 = vld [vmem:[#allocation6 + $0x30] sm:$0xff]  }
  0x1d   :  { %574 = vmatprep.subr.bf16.mxu0 %v637_v0  ;;  %614 = vmatprep.subr.bf16.mxu1 %v637_v0  ;;  %v639_v2 = vld [vmem:[#allocation6 + $0x28] sm:$0xff]   ;;  %v640_v3 = vld [vmem:[#allocation6 + $0x20] sm:$0xff]   ;;  %v646_v5 = vld [vmem:[#allocation3 + $0x30] sm:$0xff]  }
  0x1e   :  { %575 = vmatpush3.bf16.msra.mxu0 %v637_v0  ;;  %622 = vmatpush3.bf16.msra.mxu1 %v637_v0  ;;  %v645_v4 = vld [vmem:[#allocation3] sm:$0xff]   ;;  %v641_v6 = vld [vmem:[#allocation6 + $0x18] sm:$0xff]   ;;  %v642_v7 = vld [vmem:[#allocation6 + $0x10] sm:$0xff]  }
  0x1f   :  { %576 = vmatprep.subr.bf16.mxu0 %v638_v1  ;;  %615 = vmatprep.subr.bf16.mxu1 %v638_v1  ;;  %v643_v8 = vld [vmem:[#allocation6 + $0x8] sm:$0xff]   ;;  %v644_v9 = vld [vmem:[#allocation6] sm:$0xff]   ;;  %v648_v11 = vld [vmem:[#allocation3 + $0x38] sm:$0xff]  }
  0x20   :  { %590 = vmatprep.mubr.bf16.mxu0 %v645_v4  ;;  %602 = vmatprep.mubr.bf16.mxu1 %v646_v5  ;;  %v647_v10 = vld [vmem:[#allocation3 + $0x8] sm:$0xff]   ;;  %v649_v12 = vld [vmem:[#allocation3 + $0x10] sm:$0xff]   ;;  %v650_v13 = vld [vmem:[#allocation3 + $0x40] sm:$0xff]  }
  0x21   :  { %v651_v14 = vld [vmem:[#allocation3 + $0x18] sm:$0xff]   ;;  %v652_v15 = vld [vmem:[#allocation3 + $0x48] sm:$0xff]   ;;  %v653_v16 = vld [vmem:[#allocation3 + $0x20] sm:$0xff]  }
  0x22   :  { %577 = vmatpush3.bf16.msra.mxu0 %v638_v1  ;;  %623 = vmatpush3.bf16.msra.mxu1 %v638_v1  ;;  %v654_v17 = vld [vmem:[#allocation3 + $0x50] sm:$0xff]   ;;  %v655_v18 = vld [vmem:[#allocation3 + $0x28] sm:$0xff]   ;;  %v656_v19 = vld [vmem:[#allocation3 + $0x58] sm:$0xff]  }
  0x23   :  { %578 = vmatprep.subr.bf16.mxu0 %v639_v2  ;;  %616 = vmatprep.subr.bf16.mxu1 %v639_v2  ;;  %v759_v20 = vld [vmem:[%s790_s2] ss:$0 sm:$0xff]  ;;  %s727_s2 = smov [#allocation8]  }
  0x24   :  { %s520_s24 = sshll.u32 %s727_s2, 4  ;;  %s521_s24 = int_to_ptr.vmem [resolvable:$true] %s520_s24 }
  0x25   :  { %s697_s25 = scalar_lea.vmem %s521_s24, 3072  ;;  %p702_p11 = scmp.lt.s32.totalorder %s521_s24, %s521_s24 }
  0x26   :  { %579 = vmatpush3.bf16.msra.mxu0 %v639_v2  ;;  %624 = vmatpush3.bf16.msra.mxu1 %v639_v2  ;;  %p698_p10 = scmp.ne.s32.totalorder %s521_s24, %s697_s25  ;;  %p703_p12 = scmp.lt.s32.totalorder %s697_s25, %s697_s25 }
  0x27   :  { %580 = vmatprep.subr.bf16.mxu0 %v640_v3  ;;  %617 = vmatprep.subr.bf16.mxu1 %v640_v3 }
  0x28   :  { %p704_p13 = por %p703_p12, %p702_p11 }
  0x2a   :  { %581 = vmatpush3.bf16.msra.mxu0 %v640_v3  ;;  %625 = vmatpush3.bf16.msra.mxu1 %v640_v3  ;;  %p705_p0 = pnand %p704_p13, %p698_p10 }
  0x2b   :  { %582 = vmatprep.subr.bf16.mxu0 %v641_v6  ;;  %618 = vmatprep.subr.bf16.mxu1 %v641_v6 }
  0x2e   :  { %583 = vmatpush3.bf16.msra.mxu0 %v641_v6  ;;  %626 = vmatpush3.bf16.msra.mxu1 %v641_v6 }
  0x2f   :  { %584 = vmatprep.subr.bf16.mxu0 %v642_v7  ;;  %619 = vmatprep.subr.bf16.mxu1 %v642_v7 }
  0x32   :  { %585 = vmatpush3.bf16.msra.mxu0 %v642_v7  ;;  %627 = vmatpush3.bf16.msra.mxu1 %v642_v7 }
  0x33   :  { %586 = vmatprep.subr.bf16.mxu0 %v643_v8  ;;  %620 = vmatprep.subr.bf16.mxu1 %v643_v8 }
  0x36   :  { %587 = vmatpush3.bf16.msra.mxu0 %v643_v8  ;;  %628 = vmatpush3.bf16.msra.mxu1 %v643_v8 }
  0x37   :  { %588 = vmatprep.subr.bf16.mxu0 %v644_v9  ;;  %621 = vmatprep.subr.bf16.mxu1 %v644_v9 }
  0x3a   :  { %589 = vmatpush3.bf16.msra.mxu0 %v644_v9  ;;  %629 = vmatpush3.bf16.msra.mxu1 %v644_v9 }
  0x3d   :  { %591 = vmatmul.mubr.bf16.vlgmr.msra.gmra.mxu0 %v647_v10  ;;  %603 = vmatmul.mubr.bf16.vlgmr.msra.gmra.mxu1 %v648_v11 }
  0x3e   :  { %594 = vmatprep.mubr.bf16.mxu0 %v649_v12  ;;  %606 = vmatprep.mubr.bf16.mxu1 %v650_v13 }
  0x45   :  { %595 = vmatmul.mubr.bf16.gmra.mxu0 %v651_v14  ;;  %607 = vmatmul.mubr.bf16.gmra.mxu1 %v652_v15 }
  0x46   :  { %598 = vmatprep.mubr.bf16.mxu0 %v653_v16  ;;  %610 = vmatprep.mubr.bf16.mxu1 %v654_v17 }
  0x4d   :  { %599 = vmatmul.mubr.bf16.gmra.mxu0 %v655_v18  ;;  %611 = vmatmul.mubr.bf16.gmra.mxu1 %v656_v19 }
  0xfd   :  { %v592_v21 = vpop.f32.mrf.mxu0  ;;  %v604_v22 = vpop.f32.mrf.mxu1 }
  0xfe   :  { %v469_v23 = vadd.f32 %v592_v21, %v759_v20  ;;  %v481_v24 = vadd.f32 %v604_v22, %v759_v20 }
  0xff   :  { %v290_v25 = vpop.f32.mrf.mxu0  ;;  %v338_v26 = vpop.f32.mrf.mxu1 }
 0x100   :  { %493 = vst [vmem:[#allocation8 + $0x10] sm:$0xff] %v469_v23  ;;  %505 = vst [vmem:[#allocation8 + $0x70] sm:$0xff] %v481_v24  ;;  %v467_v27 = vadd.f32 %v759_v20, %v290_v25  ;;  %v479_v28 = vadd.f32 %v759_v20, %v338_v26 }
 0x101   :  { %v593_v29 = vpop.f32.mrf.mxu0  ;;  %v605_v30 = vpop.f32.mrf.mxu1 }
 0x102   :  { %491 = vst [vmem:[#allocation8] sm:$0xff] %v467_v27  ;;  %503 = vst [vmem:[#allocation8 + $0x60] sm:$0xff] %v479_v28  ;;  %v470_v31 = vadd.f32 %v593_v29, %v759_v20  ;;  %v482_v32 = vadd.f32 %v605_v30, %v759_v20 }
 0x103   :  { %v293_v33 = vpop.f32.mrf.mxu0  ;;  %v341_v34 = vpop.f32.mrf.mxu1 }
 0x104   :  { %494 = vst [vmem:[#allocation8 + $0x18] sm:$0xff] %v470_v31  ;;  %506 = vst [vmem:[#allocation8 + $0x78] sm:$0xff] %v482_v32  ;;  %v468_v35 = vadd.f32 %v759_v20, %v293_v33  ;;  %v480_v36 = vadd.f32 %v759_v20, %v341_v34 }
 0x105   :  { %v596_v37 = vpop.f32.mrf.mxu0  ;;  %v608_v38 = vpop.f32.mrf.mxu1 }
 0x106   :  { %492 = vst [vmem:[#allocation8 + $0x8] sm:$0xff] %v468_v35  ;;  %504 = vst [vmem:[#allocation8 + $0x68] sm:$0xff] %v480_v36  ;;  %v473_v39 = vadd.f32 %v596_v37, %v759_v20  ;;  %v485_v40 = vadd.f32 %v608_v38, %v759_v20 }
 0x107   :  { %v306_v41 = vpop.f32.mrf.mxu0  ;;  %v354_v42 = vpop.f32.mrf.mxu1 }
 0x108   :  { %497 = vst [vmem:[#allocation8 + $0x30] sm:$0xff] %v473_v39  ;;  %509 = vst [vmem:[#allocation8 + $0x90] sm:$0xff] %v485_v40  ;;  %v471_v43 = vadd.f32 %v759_v20, %v306_v41  ;;  %v483_v44 = vadd.f32 %v759_v20, %v354_v42 }
 0x109   :  { %v597_v45 = vpop.f32.mrf.mxu0  ;;  %v609_v46 = vpop.f32.mrf.mxu1 }
 0x10a   :  { %495 = vst [vmem:[#allocation8 + $0x20] sm:$0xff] %v471_v43  ;;  %507 = vst [vmem:[#allocation8 + $0x80] sm:$0xff] %v483_v44  ;;  %v474_v47 = vadd.f32 %v597_v45, %v759_v20  ;;  %v486_v48 = vadd.f32 %v609_v46, %v759_v20 }
 0x10b   :  { %v309_v49 = vpop.f32.mrf.mxu0  ;;  %v357_v50 = vpop.f32.mrf.mxu1 }
 0x10c   :  { %498 = vst [vmem:[#allocation8 + $0x38] sm:$0xff] %v474_v47  ;;  %510 = vst [vmem:[#allocation8 + $0x98] sm:$0xff] %v486_v48  ;;  %v472_v51 = vadd.f32 %v759_v20, %v309_v49  ;;  %v484_v52 = vadd.f32 %v759_v20, %v357_v50 }
 0x10d   :  { %v600_v53 = vpop.f32.mrf.mxu0  ;;  %v612_v54 = vpop.f32.mrf.mxu1 }
 0x10e   :  { %496 = vst [vmem:[#allocation8 + $0x28] sm:$0xff] %v472_v51  ;;  %508 = vst [vmem:[#allocation8 + $0x88] sm:$0xff] %v484_v52  ;;  %v477_v55 = vadd.f32 %v600_v53, %v759_v20  ;;  %v489_v56 = vadd.f32 %v612_v54, %v759_v20 }
 0x10f   :  { %v322_v57 = vpop.f32.mrf.mxu0  ;;  %v370_v58 = vpop.f32.mrf.mxu1 }
 0x110   :  { %501 = vst [vmem:[#allocation8 + $0x50] sm:$0xff] %v477_v55  ;;  %513 = vst [vmem:[#allocation8 + $0xb0] sm:$0xff] %v489_v56  ;;  %v475_v59 = vadd.f32 %v759_v20, %v322_v57  ;;  %v487_v60 = vadd.f32 %v759_v20, %v370_v58 }
 0x111   :  { %v601_v61 = vpop.f32.mrf.mxu0  ;;  %v613_v62 = vpop.f32.mrf.mxu1 }
 0x112   :  { %499 = vst [vmem:[#allocation8 + $0x40] sm:$0xff] %v475_v59  ;;  %511 = vst [vmem:[#allocation8 + $0xa0] sm:$0xff] %v487_v60  ;;  %v478_v63 = vadd.f32 %v601_v61, %v759_v20  ;;  %v490_v0 = vadd.f32 %v613_v62, %v759_v20 }
 0x113   :  { %v325_v1 = vpop.f32.mrf.mxu0  ;;  %v373_v2 = vpop.f32.mrf.mxu1 }
 0x114   :  { %502 = vst [vmem:[#allocation8 + $0x58] sm:$0xff] %v478_v63  ;;  %514 = vst [vmem:[#allocation8 + $0xb8] sm:$0xff] %v490_v0  ;;  %v476_v3 = vadd.f32 %v759_v20, %v325_v1  ;;  %v488_v4 = vadd.f32 %v759_v20, %v373_v2 }
 0x116   :  { %500 = vst [vmem:[#allocation8 + $0x48] sm:$0xff] %v476_v3  ;;  %512 = vst [vmem:[#allocation8 + $0xa8] sm:$0xff] %v488_v4 }
 0x117   :  { %708 = shalt.err (!%p705_p0)
}
 0x118   :  { %s728_s26 = smov 128   ;;  %s729_s27 = smov 8  }
 0x119   :  { %526 = dma.vmem_to_hbm [thread:$0]  %s521_s24, 3072, %s791_s3, [#allocation5], %s728_s26, %s728_s26, %s729_s27  }
 0x11a   :  { %721 = dma.done.wait [#allocation5], 3072  }
 0x11b   :  { %722 = vsyncadd [#allocation5], 4294964224 }
 0x11c   :  { %530 = vsyncpa [#allocation4], 1 }
 0x11d   :  { %531 = vsyncpa [#allocation7], 1 }
 0x11e   :  { %532 = vsyncpa [#allocation5], 1 }

</bundles_post_ra>
